<compile_context>
chip_gen: v5e
topology: v5e:2x2
jax: 0.10.0
libtpu: 0.0.40
codegen_flags: <defaults>
</compile_context>

<pallas_src>
import functools

import jax
import jax.numpy as jnp
from jax import lax
from jax.experimental import pallas as pl
from jax.experimental.pallas import tpu as pltpu


def _round_up(x, m):
    return ((x + m - 1) // m) * m


def _pick_rows_tile(rows, row_bytes, budget, sub):
    """Largest sublane-multiple row tile fitting `budget` bytes per buffer."""
    tile = max(sub, (budget // max(row_bytes, 1)) // sub * sub)
    tile = min(tile, _round_up(rows, sub))
    # v7x has 2 TensorCores: with "parallel" batch semantics a single-tile grid leaves one core
    # idle, so split a large single tile in two (even tile count).  Small inputs stay single-tile.
    if pl.cdiv(rows, tile) == 1 and rows > 2 * sub and rows * row_bytes >= (4 << 20):
        tile = max(sub, _round_up(pl.cdiv(rows, 2), sub))
    return tile


def _packed_linear_sigmoid_kernel(x_ref, w_ref, b_ref, o_ref):
    # x_ref: (TILE_P, 128) VMEM — R = 128//D logical rows packed per lane-row (lane-dense)
    # w_ref: (128, R)      VMEM — block-diagonal weight, resident across grid steps
    # b_ref: (1, 1)        SMEM scalar
    # o_ref: (TILE_P, R)   f32
    z = jnp.dot(x_ref[...], w_ref[...], preferred_element_type=jnp.float32) + b_ref[0, 0]
    o_ref[...] = 1.0 / (1.0 + jnp.exp(-z))   # exp on the EUP slot; exact divide is free slack


def _rowdot_sigmoid_kernel(x_ref, w_ref, b_ref, o_ref, acc_ref, *, d_total, tile_d):
    # x_ref: (TILE_B, TILE_D), w_ref: (1, TILE_D), b_ref: (1,1) SMEM,
    # o_ref: (TILE_B, 1), acc_ref: (TILE_B, 1) f32 scratch (resident across the k axis)
    k = pl.program_id(1)

    @pl.when(k == 0)
    def _():
        acc_ref[...] = jnp.zeros_like(acc_ref)

    x = x_ref[...].astype(jnp.float32)
    w = w_ref[...].astype(jnp.float32)
    prod = x * w                                   # VPU broadcast-mul, f32 accumulate
    if d_total % tile_d != 0:                      # static: emitted only for ragged feature tiles
        col = k * tile_d + lax.broadcasted_iota(jnp.int32, prod.shape, 1)
        prod = jnp.where(col < d_total, prod, 0.0)  # mask garbage lanes of the last K block
    acc_ref[...] += jnp.sum(prod, axis=-1, keepdims=True)   # XLU lane reduction

    @pl.when(k == pl.num_programs(1) - 1)
    def _():
        z = acc_ref[...] + b_ref[0, 0]
        o_ref[...] = 1.0 / (1.0 + jnp.exp(-z))


def binary_classifier_forward(x, weight, bias, *, budget_per_buffer=8 << 20, buffer_count=2):
    """sigmoid(x @ weight.T + bias).squeeze() for x:(B,D), weight:(1,D), bias:(1,) -> f32.

    No wrapper-side pad/astype copies (the op is HBM-bound).  `budget_per_buffer` sizes the
    per-block DMA (8 MiB default works on v5e/v6e/v7x with the explicit vmem_limit below; on
    v7x/v6e it can be raised to 12-16 MiB, on v5e keep <= 8 MiB).  `buffer_count=3` enables
    deeper pipelining (useful on v7x's 3.2 TB/s HBM).
    """
    B, D = x.shape
    assert weight.shape == (1, D)
    itemsize = jnp.dtype(x.dtype).itemsize
    sub = 8 if itemsize >= 4 else (16 if itemsize == 2 else 32)
    bias_smem = bias.reshape(1, 1).astype(jnp.float32)

    cost = pl.CostEstimate(
        flops=2 * B * D,
        transcendentals=B,
        bytes_accessed=itemsize * (B * D + D) + 4 * B + 4,
    )
    # Explicit scoped-VMEM limit: covers double/triple-buffered x blocks + resident weight with
    # headroom, above v5e's 16 MiB default scope and safely under v7x's 64 MiB physical VMEM.
    vmem_limit = int(min(100 << 20, max(32 << 20, (buffer_count + 2) * budget_per_buffer + (8 << 20))))
    x_mode = {} if buffer_count == 2 else {"pipeline_mode": pl.Buffered(buffer_count)}

    if D <= 64 and 128 % D == 0 and (B * D) % 128 == 0:
        # ------------- lane-dense packed path (small feature dim) -------------
        R = 128 // D
        P = B // R
        x_packed = x.reshape(P, 128)              # contiguous reshape: layout change only, no copy
        # Block-diagonal weight (128, R): x_packed @ w_bd yields R independent row-dots per row.
        w_bd = jnp.kron(jnp.eye(R, dtype=jnp.float32), weight.astype(jnp.float32)).T
        w_bd = w_bd.astype(x.dtype)
        tile_p = _pick_rows_tile(P, 128 * itemsize, budget_per_buffer, sub)

        out = pl.pallas_call(
            _packed_linear_sigmoid_kernel,
            out_shape=jax.ShapeDtypeStruct((P, R), jnp.float32),
            grid_spec=pltpu.PrefetchScalarGridSpec(
                num_scalar_prefetch=0,
                grid=(pl.cdiv(P, tile_p),),                     # ragged last tile; no padding copy
                in_specs=[
                    pl.BlockSpec((tile_p, 128), lambda i: (i, 0), **x_mode),   # x: pipelined
                    pl.BlockSpec((128, R), lambda i: (0, 0)),                  # w_bd: resident
                    pl.BlockSpec(memory_space=pltpu.MemorySpace.SMEM),         # bias scalar
                ],
                out_specs=pl.BlockSpec((tile_p, R), lambda i: (i, 0)),
            ),
            compiler_params=pltpu.CompilerParams(
                dimension_semantics=("parallel",),
                vmem_limit_bytes=vmem_limit,
            ),
            cost_estimate=cost,
        )(x_packed, w_bd, bias_smem)
        out2d = out.reshape(B, 1)
    else:
        # ------------- general path (lane-dense already, D >= 128-ish) -------------
        row_bytes = D * itemsize
        if sub * row_bytes <= budget_per_buffer:
            tile_d, nk = D, 1
            tile_b = _pick_rows_tile(B, row_bytes, budget_per_buffer, sub)
        else:
            # Feature dim too large even for a minimum-height block: tile D (reduction axis last).
            tile_b = sub
            tile_d = max(128, (budget_per_buffer // (sub * itemsize)) // 128 * 128)
            tile_d = min(tile_d, _round_up(D, 128))
            nk = pl.cdiv(D, tile_d)

        kernel = functools.partial(_rowdot_sigmoid_kernel, d_total=D, tile_d=tile_d)
        out2d = pl.pallas_call(
            kernel,
            out_shape=jax.ShapeDtypeStruct((B, 1), jnp.float32),
            grid_spec=pltpu.PrefetchScalarGridSpec(
                num_scalar_prefetch=0,
                grid=(pl.cdiv(B, tile_b), nk),                  # ragged last tiles; no padding copy
                in_specs=[
                    pl.BlockSpec((tile_b, tile_d), lambda i, k: (i, k), **x_mode),
                    pl.BlockSpec((1, tile_d), lambda i, k: (0, k)),
                    pl.BlockSpec(memory_space=pltpu.MemorySpace.SMEM),
                ],
                out_specs=pl.BlockSpec((tile_b, 1), lambda i, k: (i, 0)),
                scratch_shapes=[pltpu.VMEM((tile_b, 1), jnp.float32)],
            ),
            compiler_params=pltpu.CompilerParams(
                dimension_semantics=("parallel", "arbitrary"),
                vmem_limit_bytes=vmem_limit,
            ),
            cost_estimate=cost,
        )(x, weight, bias_smem)

    # torch .squeeze(): drop all singleton dims — (B, 1) -> (B,)  (or () when B == 1)
    return jnp.squeeze(out2d)


if __name__ == "__main__":
    key = jax.random.PRNGKey(0)
    kx, kw, kb, kx2 = jax.random.split(key, 4)

    def ref_fn(x, w, b):
        return jnp.squeeze(jax.nn.sigmoid(
            x.astype(jnp.float32) @ w.astype(jnp.float32).T + b.astype(jnp.float32)))

    # BinaryClassifier(input_dim=32) on a small batch -> lane-dense packed path (D < 128).
    B, D = 8, 32
    x = jax.random.normal(kx, (B, D), dtype=jnp.float32)
    bound = 1.0 / jnp.sqrt(jnp.float32(D))
    weight = jax.random.uniform(kw, (1, D), jnp.float32, -bound, bound)
    bias = jax.random.uniform(kb, (1,), jnp.float32, -bound, bound)

    y = binary_classifier_forward(x, weight, bias)
    jax.block_until_ready(y)
    assert y.shape == (B,)
    assert jnp.allclose(y, ref_fn(x, weight, bias), atol=1e-6), (y, ref_fn(x, weight, bias))

    # Ragged multi-tile packed grid (B=100 -> 25 packed rows, tile of 8, no padding copy).
    B2 = 100
    x2 = jax.random.normal(kx2, (B2, D), dtype=jnp.float32)
    y2 = binary_classifier_forward(x2, weight, bias, budget_per_buffer=4096)
    jax.block_until_ready(y2)
    assert y2.shape == (B2,)
    assert jnp.allclose(y2, ref_fn(x2, weight, bias), atol=1e-6)

    # General path (D not lane-packable), single feature tile, ragged batch tile.
    B3, D3 = 20, 200
    x3 = jax.random.normal(kx, (B3, D3), dtype=jnp.float32)
    w3 = jax.random.uniform(kw, (1, D3), jnp.float32, -bound, bound)
    y3 = binary_classifier_forward(x3, w3, bias)
    jax.block_until_ready(y3)
    assert y3.shape == (B3,)
    assert jnp.allclose(y3, ref_fn(x3, w3, bias), atol=1e-5)

    # K-tiled general path (tiny budget forces feature-axis tiling + ragged/masked last K block).
    B4, D4 = 20, 300
    x4 = jax.random.normal(kx, (B4, D4), dtype=jnp.float32)
    w4 = jax.random.uniform(kw, (1, D4), jnp.float32, -bound, bound)
    y4 = binary_classifier_forward(x4, w4, bias, budget_per_buffer=4096)
    jax.block_until_ready(y4)
    assert y4.shape == (B4,)
    assert jnp.allclose(y4, ref_fn(x4, w4, bias), atol=1e-5)

    # bf16-in-HBM inputs (no wrapper-side cast; kernel accumulates in f32).
    xb = x.astype(jnp.bfloat16)
    wb = weight.astype(jnp.bfloat16)
    yb = binary_classifier_forward(xb, wb, bias)
    jax.block_until_ready(yb)
    assert yb.shape == (B,)
    assert jnp.allclose(yb, ref_fn(x, weight, bias), atol=1e-2)

    print("KERNEL_OK")
</pallas_src>

<mosaic_0001>
module attributes {stable_mosaic.version = 11 : i64} {
  func.func @_packed_linear_sigmoid_kernel(%arg0: i32, %arg1: memref<8x128xf32, #tpu.memory_space<vmem>>, %arg2: memref<128x4xf32, #tpu.memory_space<vmem>>, %arg3: memref<1x1xf32, #tpu.memory_space<smem>>, %arg4: memref<8x4xf32, #tpu.memory_space<vmem>>) attributes {dimension_semantics = [#tpu.dimension_semantics<parallel>], iteration_bounds = array<i64: 1>, scalar_prefetch = 0 : i64, scratch_operands = 0 : i64, tpu.core_type = #tpu.core_type<tc>, window_params = [{transform_indices = @transform_0, window_bounds = array<i64: 8, 128>}, {pipeline_mode = #tpu.pipeline_mode<synchronous>, transform_indices = @transform_1, window_bounds = array<i64: 128, 4>}, {transform_indices = @transform_2, window_bounds = array<i64: 1, 1>}, {transform_indices = @transform_3, window_bounds = array<i64: 8, 4>}]} {
    %c0 = arith.constant 0 : index
    %c0_0 = arith.constant 0 : index
    %0 = vector.load %arg1[%c0, %c0_0] : memref<8x128xf32, #tpu.memory_space<vmem>>, vector<8x128xf32>
    %c0_1 = arith.constant 0 : index
    %c0_2 = arith.constant 0 : index
    %1 = vector.load %arg2[%c0_1, %c0_2] : memref<128x4xf32, #tpu.memory_space<vmem>>, vector<128x4xf32>
    %cst = arith.constant dense<0.000000e+00> : vector<8x4xf32>
    %2 = tpu.matmul %0, %1, %cst {dimension_numbers = #tpu.dot_dimension_numbers<[1], [0], [0], [1], [0, 0, 1, 1], [], []>} : vector<8x128xf32>, vector<128x4xf32>, vector<8x4xf32> -> vector<8x4xf32>
    %c0_3 = arith.constant 0 : index
    %c0_4 = arith.constant 0 : index
    %3 = memref.load %arg3[%c0_3, %c0_4] : memref<1x1xf32, #tpu.memory_space<smem>>
    %4 = vector.broadcast %3 : f32 to vector<8x4xf32>
    %5 = arith.addf %2, %4 : vector<8x4xf32>
    %cst_5 = arith.constant 0.000000e+00 : f32
    %6 = vector.broadcast %cst_5 : f32 to vector<8x4xf32>
    %7 = arith.subf %6, %5 : vector<8x4xf32>
    %8 = math.exp %7 : vector<8x4xf32>
    %cst_6 = arith.constant 1.000000e+00 : f32
    %9 = vector.broadcast %cst_6 : f32 to vector<8x4xf32>
    %10 = arith.addf %9, %8 : vector<8x4xf32>
    %cst_7 = arith.constant 1.000000e+00 : f32
    %11 = vector.broadcast %cst_7 : f32 to vector<8x4xf32>
    %12 = arith.divf %11, %10 : vector<8x4xf32>
    %c0_8 = arith.constant 0 : index
    %c0_9 = arith.constant 0 : index
    %13 = vector.load %arg4[%c0_8, %c0_9] : memref<8x4xf32, #tpu.memory_space<vmem>>, vector<8x4xf32>
    tpu.vector_store %arg4[%c0_8, %c0_9], %12 {strides = array<i32>} : memref<8x4xf32, #tpu.memory_space<vmem>>, vector<8x4xf32>,
    return
  }
  func.func @transform_0(%arg0: i32) -> (i32, i32) {
    %c0_i32 = arith.constant 0 : i32
    %c0_i32_0 = arith.constant 0 : i32
    return %arg0, %c0_i32 : i32, i32
  }
  func.func @transform_1(%arg0: i32) -> (i32, i32) {
    %c0_i32 = arith.constant 0 : i32
    %c0_i32_0 = arith.constant 0 : i32
    %c0_i32_1 = arith.constant 0 : i32
    return %c0_i32, %c0_i32_0 : i32, i32
  }
  func.func @transform_2(%arg0: i32) -> (i32, i32) {
    %c0_i32 = arith.constant 0 : i32
    %c0_i32_0 = arith.constant 0 : i32
    %c0_i32_1 = arith.constant 0 : i32
    return %c0_i32, %c0_i32_0 : i32, i32
  }
  func.func @transform_3(%arg0: i32) -> (i32, i32) {
    %c0_i32 = arith.constant 0 : i32
    %c0_i32_0 = arith.constant 0 : i32
    return %arg0, %c0_i32 : i32, i32
  }
}

</mosaic_0001>

<bundles_post_ra>
// kernel: tpu_custom_call.1
= control target key start
LH: loop header
LB: loop body
LE: loop exit
PB: predicated region body
PF: predicated region fallthrough
CT: control target
= control target key end

     0   :  { %9 = vsyncpa [#allocation4], 0  ;;  %vm74_vm3 = vcmask 31744   ;;  %s207_s0 = inlined_call_operand.vmem [shape: f32[2,128], index: 0, kind: input, shape index: {}]   ;;  %s208_s1 = inlined_call_operand.vmem [shape: f32[128,4], index: 1, kind: input, shape index: {}]   ;;  %s209_s2 = inlined_call_operand.<no memory space> [shape: f32[1,1], index: 2, kind: input, shape index: {}]   ;;  %s210_s3 = inlined_call_operand.hbm [shape: f32[2,4], index: 3, kind: output, shape index: {}]  }
   0x1   :  { %v32_v0 = vld [vmem:[%s208_s1 + $0x78] sm:$0xff]  ;;  %v31_v1 = vld [vmem:[%s208_s1 + $0x70] sm:$0xff]  ;;  %v30_v2 = vld [vmem:[%s208_s1 + $0x68] sm:$0xff]  ;;  %v34_v17 = vstv %s209_s2 }
   0x2   :  { %35 = vmatpush.msra.mxu0 %v32_v0  ;;  %v29_v3 = vld [vmem:[%s208_s1 + $0x60] sm:$0xff]  ;;  %v28_v4 = vld [vmem:[%s208_s1 + $0x58] sm:$0xff]  ;;  %v27_v5 = vld [vmem:[%s208_s1 + $0x50] sm:$0xff] }
   0x3   :  { %v26_v6 = vld [vmem:[%s208_s1 + $0x48] sm:$0xff]  ;;  %v25_v7 = vld [vmem:[%s208_s1 + $0x40] sm:$0xff]  ;;  %v24_v8 = vld [vmem:[%s208_s1 + $0x38] sm:$0xff] }
   0x4   :  { %36 = vmatpush.msra.mxu0 %v31_v1  ;;  %v23_v9 = vld [vmem:[%s208_s1 + $0x30] sm:$0xff]  ;;  %v22_v10 = vld [vmem:[%s208_s1 + $0x28] sm:$0xff]  ;;  %v21_v11 = vld [vmem:[%s208_s1 + $0x20] sm:$0xff] }
   0x5   :  { %v20_v12 = vld [vmem:[%s208_s1 + $0x18] sm:$0xff]  ;;  %v19_v13 = vld [vmem:[%s208_s1 + $0x10] sm:$0xff]  ;;  %v18_v14 = vld [vmem:[%s208_s1 + $0x8] sm:$0xff] }
   0x6   :  { %37 = vmatpush.msra.mxu0 %v30_v2  ;;  %v17_v15 = vld [vmem:[%s208_s1] sm:$0xff] }
   0x7   :  { %v16_v16 = vld [vmem:[%s207_s0] sm:$0xff] }
   0x8   :  { %38 = vmatpush.msra.mxu0 %v29_v3 }
   0xa   :  { %39 = vmatpush.msra.mxu0 %v28_v4 }
   0xc   :  { %40 = vmatpush.msra.mxu0 %v27_v5 }
   0xe   :  { %41 = vmatpush.msra.mxu0 %v26_v6 }
  0x10   :  { %42 = vmatpush.msra.mxu0 %v25_v7 }
  0x12   :  { %43 = vmatpush.msra.mxu0 %v24_v8 }
  0x14   :  { %44 = vmatpush.msra.mxu0 %v23_v9 }
  0x16   :  { %45 = vmatpush.msra.mxu0 %v22_v10 }
  0x18   :  { %46 = vmatpush.msra.mxu0 %v21_v11 }
  0x1a   :  { %47 = vmatpush.msra.mxu0 %v20_v12 }
  0x1c   :  { %48 = vmatpush.msra.mxu0 %v19_v13 }
  0x1e   :  { %49 = vmatpush.msra.mxu0 %v18_v14 }
  0x20   :  { %50 = vmatpush.msra.mxu0 %v17_v15 }
  0x21   :  { %51 = vmatmul.f32.vlgmr.msra.gmra.mxu0 %v16_v16 }
  0x9e   :  { %v52_v18 = vpop.f32.mrf.mxu0 }
  0x9f   :  { %v53_v19 = vadd.f32 %v52_v18, %v34_v17 }
  0xa1   :  { %v55_v20 = vsub.f32 0.0, %v53_v19 }
  0xa3   :  { %v56_v21 = vmul.f32 1.442695, %v55_v20 }
  0xa5   :  { %97 = vpow2.f32 %v56_v21 }
  0xab   :  { %v98_v22 = vpop.eup %97 }
  0xac   :  { %v58_v23 = vadd.f32 1.0, %v98_v22 }
  0xae   :  { %99 = vrcp.f32 %v58_v23  ;;  %v70_v27 = vand.u32 2147483648, %v58_v23  ;;  %v68_v29 = vand.u32 2147483647, %v58_v23  ;;  %vm64_vm1 = vweird.f32 %v58_v23 }
  0xb0   :  { %v71_v31 = vor.u32 1.1754944e-38, %v70_v27  ;;  %vm69_vm4 = vcmp.eq.f32.partialorder %v68_v29, 8.507059e+37 }
  0xb4   :  { %v100_v24 = vpop.eup %99 }
  0xb5   :  { %v60_v25 = vmul.f32 %v100_v24, %v58_v23  ;;  %vm65_vm0 = vweird.f32 %v100_v24 }
  0xb6   :  { %vm66_vm2 = vmor %vm64_vm1, %vm65_vm0 }
  0xb7   :  { %v61_v26 = vsub.f32 1.0, %v60_v25 }
  0xb9   :  { %v62_v28 = vmul.f32 %v100_v24, %v61_v26 }
  0xbb   :  { %v63_v30 = vadd.f32 %v100_v24, %v62_v28 }
  0xbd   :  { %v67_v32 = vsel %vm66_vm2, %v100_v24, %v63_v30 }
  0xbe   :  { %v72_v33 = vsel %vm69_vm4, %v71_v31, %v67_v32 }
  0xbf   :  { %75 = vst.msk [vmem:[#allocation3] sm:$0xff] %vm74_vm3, %v72_v33 }
  0xc0   :  { %79 = vsyncadd [#allocation4], 96  ;;  %s82_s2 = sshll.u32 %s210_s3, 4  ;;  %s127_s21 = smov [#allocation3]   ;;  %s83_s2 = int_to_ptr.hbm [resolvable:$true] %s82_s2 }
  0xc1   :  { %s80_s22 = sshll.u32 %s127_s21, 4  ;;  %s128_s23 = smov 32   ;;  %s81_s22 = int_to_ptr.vmem [resolvable:$true] %s80_s22 }
  0xc2   :  { %s129_s24 = smov 2  }
  0xc3   :  { %88 = dma.vmem_to_hbm [thread:$0]  %s81_s22, 32, %s83_s2, [#allocation4], %s128_s23, %s128_s23, %s129_s24  }
  0xc4   :  { %125 = dma.done.wait [#allocation4], 128  }
  0xc5   :  { %126 = vsyncadd [#allocation4], 4294967168 }
  0xc6   :  { %93 = vsyncpa [#allocation4], 1 }

</bundles_post_ra>
